<compile_context>
chip_gen: v7x
topology: tpu7x:2x2x1
jax: 0.10.0
libtpu: 0.0.40
codegen_flags: <defaults>
</compile_context>

<pallas_src>
import functools
import math

import jax
import jax.numpy as jnp
from jax.experimental import pallas as pl
from jax.experimental.pallas import tpu as pltpu

_NEG_INF = -1e30  # additive mask value (matches reference; keeps all-masked rows NaN-free)


def _round_up(x, m):
    return (x + m - 1) // m * m


def _sublane_tile(dtype):
    return {4: 8, 2: 16, 1: 32}.get(jnp.dtype(dtype).itemsize, 8)


def _padded_block_bytes(shape, dtype):
    """VMEM bytes of a block after (sublane, lane) tile padding."""
    dims = [int(v) for v in shape]
    if len(dims) >= 1:
        dims[-1] = _round_up(dims[-1], 128)
    if len(dims) >= 2:
        dims[-2] = _round_up(dims[-2], _sublane_tile(dtype))
    n = 1
    for v in dims:
        n *= v
    return n * jnp.dtype(dtype).itemsize


def _vmem_limit_bytes():
    cap = 64 * 1024 * 1024  # conservative fallback (v7x-sized physical VMEM)
    try:
        info = pltpu.get_tpu_info()
        cap = int(getattr(info, "vmem_capacity_bytes", cap))
    except Exception:
        pass
    # 128-MiB chips (v5e/v6e) -> 64 MiB; 64-MiB chips (v7x) -> 32 MiB (scoped default)
    return int(min(96 * 1024 * 1024, max(32 * 1024 * 1024, cap // 2)))


def _step_vmem_bytes(bt, L, Lm, Sp, E, H, stream_dtype):
    """Double-buffered, tile-padding-aware VMEM bytes for one grid step."""
    d = E // H
    blocks = []
    if L == 1:
        blocks.append(((bt, E), stream_dtype))            # q
    else:
        blocks.append(((bt, L, E), stream_dtype))
    blocks += [((bt, E, Sp), stream_dtype)] * 3           # k, v, logit_key
    if Lm == 1:
        blocks.append(((bt, Sp), jnp.float32))            # mask bias
    else:
        blocks.append(((bt, Lm, Sp), jnp.float32))
    if L == 1:
        blocks.append(((bt, Sp), jnp.float32))            # output logits
    else:
        blocks.append(((bt, L, Sp), jnp.float32))
    tot = sum(_padded_block_bytes(s, dt) for s, dt in blocks)
    tot += _padded_block_bytes((H, d, E), stream_dtype)   # project_out weight
    return 2 * tot                                        # double-buffered


def _pick_batch_tile(B, L, Lm, Sp, E, H, stream_dtype, budget):
    """Largest batch tile whose padded, double-buffered working set fits the budget."""
    if B <= 8:
        return B                                          # single tiny step
    cap = min(4096, _round_up(B, 8))
    if _step_vmem_bytes(cap, L, Lm, Sp, E, H, stream_dtype) <= budget:
        bt = cap
    else:
        lo, hi = 8, cap                                   # lo fits (best effort), hi doesn't
        while hi - lo > 8:
            mid = ((lo + hi) // 2) // 8 * 8
            if _step_vmem_bytes(mid, L, Lm, Sp, E, H, stream_dtype) <= budget:
                lo = mid
            else:
                hi = mid
        bt = lo
    # keep >= 2 grid steps so the "parallel" batch axis can shard across the two
    # TensorCores of a v7x-class chip (near-free on single-TC chips).
    if B >= 16 and _round_up(B, bt) <= bt:
        bt = max(8, _round_up((B + 1) // 2, 8))
    return int(bt)


def _pointer_attn_kernel(q_ref, k_ref, v_ref, lk_ref, bias_ref, w_ref, o_ref,
                         *, num_heads, approx_recip):
    """One batch tile per grid step.

    Block shapes (Bt = batch tile, Sp = padded source length, E = H*d):
      q_ref    [Bt, E]        (L == 1)   or [Bt, L, E]   (L > 1)
      k_ref    [Bt, E, Sp]    keys:   E on sublanes, Sp on lanes (NN matmul layout)
      v_ref    [Bt, E, Sp]    values: same layout
      lk_ref   [Bt, E, Sp]    logit keys, pre-transposed in the wrapper
      bias_ref [Bt, Sp]       (Lm == 1)  or [Bt, Lm, Sp] (per-query-row mask)
      w_ref    [H, d, E]      project_out weight (W.T, head-sliced)
      o_ref    [Bt, Sp]       (L == 1)   or [Bt, L, Sp]
    """
    H = num_heads
    Bt, E, Sp = k_ref.shape
    d = E // H
    L = 1 if len(q_ref.shape) == 2 else q_ref.shape[1]

    scale_d = jnp.float32(1.0 / math.sqrt(d))
    scale_e = jnp.float32(1.0 / math.sqrt(E))

    bias = bias_ref[...].astype(jnp.float32)
    if len(bias_ref.shape) == 2:
        bias = bias[:, None, :]                            # [Bt, 1, Sp]

    qv = q_ref[...]                                        # [Bt, E] or [Bt, L, E]

    # fused head-concat + project_out accumulator:  glimpse = sum_h o_h @ W_h
    glimpse = jnp.zeros((Bt * L, E), jnp.float32)

    for h in range(H):                                     # static unroll, H is small
        lo = h * d
        if L == 1:
            qh = qv[:, lo:lo + d][:, None, :]              # [Bt, 1, d]
        else:
            qh = qv[:, :, lo:lo + d]                       # [Bt, L, d]
        kh = k_ref[:, lo:lo + d, :]                        # [Bt, d, Sp]
        vh = v_ref[:, lo:lo + d, :]                        # [Bt, d, Sp]
        wh = w_ref[h]                                      # [d, E]

        # scores: per-batch [L,d] @ [d,Sp] -- NN matmul, no transposes.
        s = jnp.einsum('bld,bds->bls', qh, kh,
                       preferred_element_type=jnp.float32)  # [Bt, L, Sp]
        s = s * scale_d + bias

        # numerically-stable softmax; normalization folded in at the end.
        m = jnp.max(s, axis=-1, keepdims=True)
        p = jnp.exp(s - m)
        den = jnp.sum(p, axis=-1, keepdims=True)            # [Bt, L, 1]

        # weighted values: contract the minor S dim on the MXU.
        o = jnp.einsum('bls,bds->bld', p.astype(vh.dtype), vh,
                       preferred_element_type=jnp.float32)   # [Bt, L, d]

        # fold the softmax denominator into the narrow [*, d] head output.
        o = o * pl.reciprocal(den, approx=approx_recip)

        # project this head and accumulate (algebraic fusion of concat + Linear).
        glimpse = glimpse + jnp.dot(
            o.reshape(Bt * L, d).astype(wh.dtype), wh,
            preferred_element_type=jnp.float32)              # [Bt*L, E]

    glimpse = glimpse.reshape(Bt, L, E)
    lk = lk_ref[...]                                         # [Bt, E, Sp]

    # logits = glimpse @ logit_key^T / sqrt(E): NN matmul, Sp (x128) on the lane axis.
    logits = jnp.einsum('ble,bes->bls', glimpse.astype(lk.dtype), lk,
                        preferred_element_type=jnp.float32) * scale_e
    if len(o_ref.shape) == 2:
        o_ref[...] = logits[:, 0, :].astype(o_ref.dtype)     # dense [Bt, Sp] store
    else:
        o_ref[...] = logits.astype(o_ref.dtype)


def pointer_attention(query, key, value, logit_key, attn_mask, w_out, *,
                      num_heads, mask_inner=True, batch_tile=None,
                      stream_dtype=None, approx_recip=None):
    """query [B,L,E]; key/value/logit_key [B,S,E]; attn_mask [B,S] or [B,L,S] bool
    (True = attend); w_out [E,E] = nn.Linear(E,E,bias=False).weight (y = x @ W.T).
    Returns float32 [B,S] when L==1 (torch .squeeze(-2) semantics), else [B,L,S].

    stream_dtype: dtype used for the HBM->VMEM streams of q/k/v/logit_key/W.
      Defaults to bfloat16 for float32 inputs (kernel is HBM-bound); softmax math,
      accumulators and the output stay float32.  Pass jnp.float32 for exact parity.
    """
    B, L, E = query.shape
    S = key.shape[1]
    H = num_heads
    d = E // H
    assert H * d == E, "embed_dim must be divisible by num_heads"

    if stream_dtype is None:
        stream_dtype = jnp.bfloat16 if query.dtype == jnp.float32 else query.dtype
    stream_dtype = jnp.dtype(stream_dtype)
    if approx_recip is None:
        approx_recip = bool(stream_dtype == jnp.dtype(jnp.bfloat16))

    # ---- mask -> additive bias (0 where attend, -1e30 where masked) ----
    if mask_inner and attn_mask is not None:
        bias = jnp.where(attn_mask, 0.0, _NEG_INF).astype(jnp.float32)
        if bias.ndim == 2:
            bias = bias[:, None, :]                          # [B, 1, S]
    else:
        bias = jnp.zeros((B, 1, S), jnp.float32)
    Lm = bias.shape[1]

    # ---- lane-dense padded S; batch tile from the padding-aware VMEM model ----
    Sp = _round_up(S, 128)
    limit = _vmem_limit_bytes()
    budget = (limit * 2) // 3                                # headroom for compiler scratch
    bt = batch_tile if batch_tile is not None else _pick_batch_tile(
        B, L, Lm, Sp, E, H, stream_dtype, budget)
    Bp = _round_up(B, bt)

    # ---- wrapper-side layout plumbing (no in-kernel transposes) ----
    def pad(x, s_axis=None, value=0.0):
        pads = [(0, 0)] * x.ndim
        pads[0] = (0, Bp - B)
        if s_axis is not None:
            pads[s_axis] = (0, Sp - S)
        return jnp.pad(x, pads, constant_values=value)

    k_t = pad(jnp.swapaxes(key, 1, 2), s_axis=2).astype(stream_dtype)         # [Bp, E, Sp]
    v_t = pad(jnp.swapaxes(value, 1, 2), s_axis=2).astype(stream_dtype)       # [Bp, E, Sp]
    lk_t = pad(jnp.swapaxes(logit_key, 1, 2), s_axis=2).astype(stream_dtype)  # [Bp, E, Sp]
    bias_p = pad(bias, s_axis=2, value=_NEG_INF)                              # [Bp, Lm, Sp]

    if L == 1:
        q_in = pad(query.reshape(B, E)).astype(stream_dtype)                  # [Bp, E]
        q_spec = pl.BlockSpec((bt, E), lambda b: (b, 0))
        out_shape = jax.ShapeDtypeStruct((Bp, Sp), jnp.float32)
        out_spec = pl.BlockSpec((bt, Sp), lambda b: (b, 0))
    else:
        q_in = pad(query).astype(stream_dtype)                                # [Bp, L, E]
        q_spec = pl.BlockSpec((bt, L, E), lambda b: (b, 0, 0))
        out_shape = jax.ShapeDtypeStruct((Bp, L, Sp), jnp.float32)
        out_spec = pl.BlockSpec((bt, L, Sp), lambda b: (b, 0, 0))

    if Lm == 1:
        bias_in = bias_p[:, 0, :]                                             # [Bp, Sp]
        bias_spec = pl.BlockSpec((bt, Sp), lambda b: (b, 0))
    else:
        bias_in = bias_p                                                      # [Bp, Lm, Sp]
        bias_spec = pl.BlockSpec((bt, Lm, Sp), lambda b: (b, 0, 0))

    # project_out weight, pre-transposed and head-sliced:  W.T -> [H, d, E]
    w_heads = jnp.transpose(w_out).reshape(H, d, E).astype(stream_dtype)

    kernel = functools.partial(_pointer_attn_kernel,
                               num_heads=H, approx_recip=approx_recip)

    out = pl.pallas_call(
        kernel,
        out_shape=out_shape,
        grid_spec=pltpu.PrefetchScalarGridSpec(
            num_scalar_prefetch=0,
            grid=(Bp // bt,),
            in_specs=[
                q_spec,
                pl.BlockSpec((bt, E, Sp), lambda b: (b, 0, 0)),   # key       [B, E, S]
                pl.BlockSpec((bt, E, Sp), lambda b: (b, 0, 0)),   # value     [B, E, S]
                pl.BlockSpec((bt, E, Sp), lambda b: (b, 0, 0)),   # logit_key [B, E, S]
                bias_spec,
                pl.BlockSpec((H, d, E), lambda b: (0, 0, 0)),     # project_out weight
            ],
            out_specs=out_spec,
        ),
        compiler_params=pltpu.CompilerParams(
            dimension_semantics=("parallel",),
            vmem_limit_bytes=limit,
        ),
    )(q_in, k_t, v_t, lk_t, bias_in, w_heads)

    if L == 1:
        return out[:B, :S]
    return out[:B, :, :S]


def pointer_attention_ref(query, key, value, logit_key, attn_mask, w_out, num_heads):
    """Pure-JAX reference mirroring the PyTorch forward."""
    B, L, E = query.shape
    d = E // num_heads

    def make_heads(x):  # '... g (h s) -> ... h g s'
        return x.reshape(B, -1, num_heads, d).transpose(0, 2, 1, 3)

    q, k, v = make_heads(query), make_heads(key), make_heads(value)
    if attn_mask.ndim == 2:
        mask = attn_mask[:, None, None, :]                                # [B,1,1,S]
    else:
        mask = attn_mask[:, None, :, :]                                   # [B,1,L,S]
    s = jnp.einsum("bhld,bhsd->bhls", q, k) / math.sqrt(d)
    s = jnp.where(mask, s, _NEG_INF)
    p = jax.nn.softmax(s, axis=-1)
    heads = jnp.einsum("bhls,bhsd->bhld", p, v)
    heads = heads.transpose(0, 2, 1, 3).reshape(B, L, E)                  # '... h n g -> ... n (h g)'
    glimpse = heads @ w_out.T
    logits = jnp.einsum("ble,bse->bls", glimpse, logit_key) / math.sqrt(E)
    return logits[:, 0, :] if L == 1 else logits


if __name__ == "__main__":
    def run_case(B, L, S, E, H, mask_ndim, seed):
        keys = jax.random.split(jax.random.PRNGKey(seed), 6)
        query = jax.random.normal(keys[0], (B, L, E), dtype=jnp.float32)
        key_t = jax.random.normal(keys[1], (B, S, E), dtype=jnp.float32)
        value = jax.random.normal(keys[2], (B, S, E), dtype=jnp.float32)
        logit_key = jax.random.normal(keys[3], (B, S, E), dtype=jnp.float32)
        w_out = 0.1 * jax.random.normal(keys[4], (E, E), dtype=jnp.float32)  # nn.Linear weight
        mshape = (B, S) if mask_ndim == 2 else (B, L, S)
        attn_mask = jax.random.uniform(keys[5], mshape) > 0.3
        attn_mask = attn_mask.at[..., 0].set(True)     # at least one valid key per row

        ref = pointer_attention_ref(query, key_t, value, logit_key, attn_mask, w_out, H)

        # strict f32 parity path
        out32 = pointer_attention(query, key_t, value, logit_key, attn_mask, w_out,
                                  num_heads=H, stream_dtype=jnp.float32)
        out32 = jax.block_until_ready(out32)
        assert not bool(jnp.isnan(out32).any()), "Logits contain NaNs"          # check_nan
        assert out32.shape == ref.shape, (out32.shape, ref.shape)
        err32 = float(jnp.max(jnp.abs(out32 - ref)))
        assert jnp.allclose(out32, ref, atol=2e-4, rtol=2e-4), f"f32 mismatch {err32}"

        # default perf path (bf16 streams + approx reciprocal)
        outbf = pointer_attention(query, key_t, value, logit_key, attn_mask, w_out,
                                  num_heads=H)
        outbf = jax.block_until_ready(outbf)
        assert not bool(jnp.isnan(outbf).any()), "Logits contain NaNs (bf16 path)"
        errbf = float(jnp.max(jnp.abs(outbf - ref)))
        assert jnp.allclose(outbf, ref, atol=1e-1, rtol=1e-1), f"bf16 mismatch {errbf}"

    run_case(B=2, L=1, S=8, E=32, H=4, mask_ndim=2, seed=0)   # common pointer (L==1) case
    run_case(B=3, L=3, S=20, E=32, H=4, mask_ndim=2, seed=1)  # multi-query, broadcast [B,S] mask
    run_case(B=2, L=3, S=20, E=32, H=4, mask_ndim=3, seed=2)  # per-query-row [B,L,S] mask
    print("KERNEL_OK")
</pallas_src>

<mosaic_0001>
module attributes {stable_mosaic.version = 11 : i64} {
  func.func @_pointer_attn_kernel(%arg0: i32, %arg1: memref<2x32xf32, #tpu.memory_space<vmem>>, %arg2: memref<2x32x128xf32, #tpu.memory_space<vmem>>, %arg3: memref<2x32x128xf32, #tpu.memory_space<vmem>>, %arg4: memref<2x32x128xf32, #tpu.memory_space<vmem>>, %arg5: memref<2x128xf32, #tpu.memory_space<vmem>>, %arg6: memref<4x8x32xf32, #tpu.memory_space<vmem>>, %arg7: memref<2x128xf32, #tpu.memory_space<vmem>>) attributes {dimension_semantics = [#tpu.dimension_semantics<parallel>], iteration_bounds = array<i64: 1>, scalar_prefetch = 0 : i64, scratch_operands = 0 : i64, tpu.core_type = #tpu.core_type<tc>, window_params = [{transform_indices = @transform_0, window_bounds = array<i64: 2, 32>}, {transform_indices = @transform_1, window_bounds = array<i64: 2, 32, 128>}, {transform_indices = @transform_2, window_bounds = array<i64: 2, 32, 128>}, {transform_indices = @transform_3, window_bounds = array<i64: 2, 32, 128>}, {transform_indices = @transform_4, window_bounds = array<i64: 2, 128>}, {pipeline_mode = #tpu.pipeline_mode<synchronous>, transform_indices = @transform_5, window_bounds = array<i64: 4, 8, 32>}, {transform_indices = @transform_6, window_bounds = array<i64: 2, 128>}]} {
    %c0 = arith.constant 0 : index
    %c0_0 = arith.constant 0 : index
    %0 = vector.load %arg5[%c0, %c0_0] : memref<2x128xf32, #tpu.memory_space<vmem>>, vector<2x128xf32>
    %1 = vector.shape_cast %0 : vector<2x128xf32> to vector<2x1x128xf32>
    %c0_1 = arith.constant 0 : index
    %c0_2 = arith.constant 0 : index
    %2 = vector.load %arg1[%c0_1, %c0_2] : memref<2x32xf32, #tpu.memory_space<vmem>>, vector<2x32xf32>
    %cst = arith.constant 0.000000e+00 : f32
    %3 = vector.broadcast %cst : f32 to vector<2x32xf32>
    %4 = vector.extract_strided_slice %2 {offsets = [0, 0], sizes = [2, 8], strides = [1, 1]} : vector<2x32xf32> to vector<2x8xf32>
    %5 = vector.shape_cast %4 : vector<2x8xf32> to vector<2x1x8xf32>
    %c0_3 = arith.constant 0 : index
    %c0_4 = arith.constant 0 : index
    %c0_5 = arith.constant 0 : index
    %6 = vector.load %arg2[%c0_3, %c0_4, %c0_5] : memref<2x32x128xf32, #tpu.memory_space<vmem>>, vector<2x8x128xf32>
    %c0_6 = arith.constant 0 : index
    %c0_7 = arith.constant 0 : index
    %c0_8 = arith.constant 0 : index
    %7 = vector.load %arg3[%c0_6, %c0_7, %c0_8] : memref<2x32x128xf32, #tpu.memory_space<vmem>>, vector<2x8x128xf32>
    %c0_9 = arith.constant 0 : index
    %c0_10 = arith.constant 0 : index
    %c0_11 = arith.constant 0 : index
    %8 = vector.load %arg6[%c0_9, %c0_10, %c0_11] : memref<4x8x32xf32, #tpu.memory_space<vmem>>, vector<1x8x32xf32>
    %9 = vector.shape_cast %8 : vector<1x8x32xf32> to vector<8x32xf32>
    "tpu.trace_start"() <{level = 10 : i32, message = "bld,bds->bls"}> : () -> ()
    %cst_12 = arith.constant dense<0.000000e+00> : vector<2x1x128xf32>
    %10 = tpu.matmul %5, %6, %cst_12 {dimension_numbers = #tpu.dot_dimension_numbers<[2], [1], [1], [2], [0, 0, 0, 1, 1, 2], [0], [0]>} : vector<2x1x8xf32>, vector<2x8x128xf32>, vector<2x1x128xf32> -> vector<2x1x128xf32>
    "tpu.trace_stop"() : () -> ()
    %cst_13 = arith.constant 0.353553385 : f32
    %11 = vector.broadcast %cst_13 : f32 to vector<2x1x128xf32>
    %12 = arith.mulf %10, %11 : vector<2x1x128xf32>
    %13 = arith.addf %12, %1 : vector<2x1x128xf32>
    %cst_14 = arith.constant dense<0xFF800000> : vector<2x1xf32>
    %14 = vector.multi_reduction <maximumf>, %13, %cst_14 [2] : vector<2x1x128xf32> to vector<2x1xf32>
    %15 = vector.shape_cast %14 : vector<2x1xf32> to vector<2x1x1xf32>
    %16 = vector.broadcast %15 : vector<2x1x1xf32> to vector<2x1x128xf32>
    %17 = arith.subf %13, %16 : vector<2x1x128xf32>
    %18 = math.exp %17 : vector<2x1x128xf32>
    %cst_15 = arith.constant dense<0.000000e+00> : vector<2x1xf32>
    %19 = vector.multi_reduction <add>, %18, %cst_15 [2] : vector<2x1x128xf32> to vector<2x1xf32>
    %20 = vector.shape_cast %19 : vector<2x1xf32> to vector<2x1x1xf32>
    "tpu.trace_start"() <{level = 10 : i32, message = "bls,bds->bld"}> : () -> ()
    %cst_16 = arith.constant dense<0.000000e+00> : vector<2x1x8xf32>
    %21 = tpu.matmul %18, %7, %cst_16 {dimension_numbers = #tpu.dot_dimension_numbers<[2], [2], [1], [1], [0, 0, 0, 1, 1, 1], [0], [0]>} : vector<2x1x128xf32>, vector<2x8x128xf32>, vector<2x1x8xf32> -> vector<2x1x8xf32>
    "tpu.trace_stop"() : () -> ()
    %22 = tpu.reciprocal %20 : vector<2x1x1xf32> -> vector<2x1x1xf32>
    %23 = vector.broadcast %22 : vector<2x1x1xf32> to vector<2x1x8xf32>
    %24 = arith.mulf %21, %23 : vector<2x1x8xf32>
    %25 = vector.shape_cast %24 : vector<2x1x8xf32> to vector<2x8xf32>
    %cst_17 = arith.constant dense<0.000000e+00> : vector<2x32xf32>
    %26 = tpu.matmul %25, %9, %cst_17 {dimension_numbers = #tpu.dot_dimension_numbers<[1], [0], [0], [1], [0, 0, 1, 1], [], []>} : vector<2x8xf32>, vector<8x32xf32>, vector<2x32xf32> -> vector<2x32xf32>
    %27 = arith.addf %3, %26 : vector<2x32xf32>
    %28 = vector.extract_strided_slice %2 {offsets = [0, 8], sizes = [2, 8], strides = [1, 1]} : vector<2x32xf32> to vector<2x8xf32>
    %29 = vector.shape_cast %28 : vector<2x8xf32> to vector<2x1x8xf32>
    %c0_18 = arith.constant 0 : index
    %c8 = arith.constant 8 : index
    %c0_19 = arith.constant 0 : index
    %30 = vector.load %arg2[%c0_18, %c8, %c0_19] : memref<2x32x128xf32, #tpu.memory_space<vmem>>, vector<2x8x128xf32>
    %c0_20 = arith.constant 0 : index
    %c8_21 = arith.constant 8 : index
    %c0_22 = arith.constant 0 : index
    %31 = vector.load %arg3[%c0_20, %c8_21, %c0_22] : memref<2x32x128xf32, #tpu.memory_space<vmem>>, vector<2x8x128xf32>
    %c1 = arith.constant 1 : index
    %c0_23 = arith.constant 0 : index
    %c0_24 = arith.constant 0 : index
    %32 = vector.load %arg6[%c1, %c0_23, %c0_24] : memref<4x8x32xf32, #tpu.memory_space<vmem>>, vector<1x8x32xf32>
    %33 = vector.shape_cast %32 : vector<1x8x32xf32> to vector<8x32xf32>
    "tpu.trace_start"() <{level = 10 : i32, message = "bld,bds->bls"}> : () -> ()
    %cst_25 = arith.constant dense<0.000000e+00> : vector<2x1x128xf32>
    %34 = tpu.matmul %29, %30, %cst_25 {dimension_numbers = #tpu.dot_dimension_numbers<[2], [1], [1], [2], [0, 0, 0, 1, 1, 2], [0], [0]>} : vector<2x1x8xf32>, vector<2x8x128xf32>, vector<2x1x128xf32> -> vector<2x1x128xf32>
    "tpu.trace_stop"() : () -> ()
    %cst_26 = arith.constant 0.353553385 : f32
    %35 = vector.broadcast %cst_26 : f32 to vector<2x1x128xf32>
    %36 = arith.mulf %34, %35 : vector<2x1x128xf32>
    %37 = arith.addf %36, %1 : vector<2x1x128xf32>
    %cst_27 = arith.constant dense<0xFF800000> : vector<2x1xf32>
    %38 = vector.multi_reduction <maximumf>, %37, %cst_27 [2] : vector<2x1x128xf32> to vector<2x1xf32>
    %39 = vector.shape_cast %38 : vector<2x1xf32> to vector<2x1x1xf32>
    %40 = vector.broadcast %39 : vector<2x1x1xf32> to vector<2x1x128xf32>
    %41 = arith.subf %37, %40 : vector<2x1x128xf32>
    %42 = math.exp %41 : vector<2x1x128xf32>
    %cst_28 = arith.constant dense<0.000000e+00> : vector<2x1xf32>
    %43 = vector.multi_reduction <add>, %42, %cst_28 [2] : vector<2x1x128xf32> to vector<2x1xf32>
    %44 = vector.shape_cast %43 : vector<2x1xf32> to vector<2x1x1xf32>
    "tpu.trace_start"() <{level = 10 : i32, message = "bls,bds->bld"}> : () -> ()
    %cst_29 = arith.constant dense<0.000000e+00> : vector<2x1x8xf32>
    %45 = tpu.matmul %42, %31, %cst_29 {dimension_numbers = #tpu.dot_dimension_numbers<[2], [2], [1], [1], [0, 0, 0, 1, 1, 1], [0], [0]>} : vector<2x1x128xf32>, vector<2x8x128xf32>, vector<2x1x8xf32> -> vector<2x1x8xf32>
    "tpu.trace_stop"() : () -> ()
    %46 = tpu.reciprocal %44 : vector<2x1x1xf32> -> vector<2x1x1xf32>
    %47 = vector.broadcast %46 : vector<2x1x1xf32> to vector<2x1x8xf32>
    %48 = arith.mulf %45, %47 : vector<2x1x8xf32>
    %49 = vector.shape_cast %48 : vector<2x1x8xf32> to vector<2x8xf32>
    %cst_30 = arith.constant dense<0.000000e+00> : vector<2x32xf32>
    %50 = tpu.matmul %49, %33, %cst_30 {dimension_numbers = #tpu.dot_dimension_numbers<[1], [0], [0], [1], [0, 0, 1, 1], [], []>} : vector<2x8xf32>, vector<8x32xf32>, vector<2x32xf32> -> vector<2x32xf32>
    %51 = arith.addf %27, %50 : vector<2x32xf32>
    %52 = vector.extract_strided_slice %2 {offsets = [0, 16], sizes = [2, 8], strides = [1, 1]} : vector<2x32xf32> to vector<2x8xf32>
    %53 = vector.shape_cast %52 : vector<2x8xf32> to vector<2x1x8xf32>
    %c0_31 = arith.constant 0 : index
    %c16 = arith.constant 16 : index
    %c0_32 = arith.constant 0 : index
    %54 = vector.load %arg2[%c0_31, %c16, %c0_32] : memref<2x32x128xf32, #tpu.memory_space<vmem>>, vector<2x8x128xf32>
    %c0_33 = arith.constant 0 : index
    %c16_34 = arith.constant 16 : index
    %c0_35 = arith.constant 0 : index
    %55 = vector.load %arg3[%c0_33, %c16_34, %c0_35] : memref<2x32x128xf32, #tpu.memory_space<vmem>>, vector<2x8x128xf32>
    %c2 = arith.constant 2 : index
    %c0_36 = arith.constant 0 : index
    %c0_37 = arith.constant 0 : index
    %56 = vector.load %arg6[%c2, %c0_36, %c0_37] : memref<4x8x32xf32, #tpu.memory_space<vmem>>, vector<1x8x32xf32>
    %57 = vector.shape_cast %56 : vector<1x8x32xf32> to vector<8x32xf32>
    "tpu.trace_start"() <{level = 10 : i32, message = "bld,bds->bls"}> : () -> ()
    %cst_38 = arith.constant dense<0.000000e+00> : vector<2x1x128xf32>
    %58 = tpu.matmul %53, %54, %cst_38 {dimension_numbers = #tpu.dot_dimension_numbers<[2], [1], [1], [2], [0, 0, 0, 1, 1, 2], [0], [0]>} : vector<2x1x8xf32>, vector<2x8x128xf32>, vector<2x1x128xf32> -> vector<2x1x128xf32>
    "tpu.trace_stop"() : () -> ()
    %cst_39 = arith.constant 0.353553385 : f32
    %59 = vector.broadcast %cst_39 : f32 to vector<2x1x128xf32>
    %60 = arith.mulf %58, %59 : vector<2x1x128xf32>
    %61 = arith.addf %60, %1 : vector<2x1x128xf32>
    %cst_40 = arith.constant dense<0xFF800000> : vector<2x1xf32>
    %62 = vector.multi_reduction <maximumf>, %61, %cst_40 [2] : vector<2x1x128xf32> to vector<2x1xf32>
    %63 = vector.shape_cast %62 : vector<2x1xf32> to vector<2x1x1xf32>
    %64 = vector.broadcast %63 : vector<2x1x1xf32> to vector<2x1x128xf32>
    %65 = arith.subf %61, %64 : vector<2x1x128xf32>
    %66 = math.exp %65 : vector<2x1x128xf32>
    %cst_41 = arith.constant dense<0.000000e+00> : vector<2x1xf32>
    %67 = vector.multi_reduction <add>, %66, %cst_41 [2] : vector<2x1x128xf32> to vector<2x1xf32>
    %68 = vector.shape_cast %67 : vector<2x1xf32> to vector<2x1x1xf32>
    "tpu.trace_start"() <{level = 10 : i32, message = "bls,bds->bld"}> : () -> ()
    %cst_42 = arith.constant dense<0.000000e+00> : vector<2x1x8xf32>
    %69 = tpu.matmul %66, %55, %cst_42 {dimension_numbers = #tpu.dot_dimension_numbers<[2], [2], [1], [1], [0, 0, 0, 1, 1, 1], [0], [0]>} : vector<2x1x128xf32>, vector<2x8x128xf32>, vector<2x1x8xf32> -> vector<2x1x8xf32>
    "tpu.trace_stop"() : () -> ()
    %70 = tpu.reciprocal %68 : vector<2x1x1xf32> -> vector<2x1x1xf32>
    %71 = vector.broadcast %70 : vector<2x1x1xf32> to vector<2x1x8xf32>
    %72 = arith.mulf %69, %71 : vector<2x1x8xf32>
    %73 = vector.shape_cast %72 : vector<2x1x8xf32> to vector<2x8xf32>
    %cst_43 = arith.constant dense<0.000000e+00> : vector<2x32xf32>
    %74 = tpu.matmul %73, %57, %cst_43 {dimension_numbers = #tpu.dot_dimension_numbers<[1], [0], [0], [1], [0, 0, 1, 1], [], []>} : vector<2x8xf32>, vector<8x32xf32>, vector<2x32xf32> -> vector<2x32xf32>
    %75 = arith.addf %51, %74 : vector<2x32xf32>
    %76 = vector.extract_strided_slice %2 {offsets = [0, 24], sizes = [2, 8], strides = [1, 1]} : vector<2x32xf32> to vector<2x8xf32>
    %77 = vector.shape_cast %76 : vector<2x8xf32> to vector<2x1x8xf32>
    %c0_44 = arith.constant 0 : index
    %c24 = arith.constant 24 : index
    %c0_45 = arith.constant 0 : index
    %78 = vector.load %arg2[%c0_44, %c24, %c0_45] : memref<2x32x128xf32, #tpu.memory_space<vmem>>, vector<2x8x128xf32>
    %c0_46 = arith.constant 0 : index
    %c24_47 = arith.constant 24 : index
    %c0_48 = arith.constant 0 : index
    %79 = vector.load %arg3[%c0_46, %c24_47, %c0_48] : memref<2x32x128xf32, #tpu.memory_space<vmem>>, vector<2x8x128xf32>
    %c3 = arith.constant 3 : index
    %c0_49 = arith.constant 0 : index
    %c0_50 = arith.constant 0 : index
    %80 = vector.load %arg6[%c3, %c0_49, %c0_50] : memref<4x8x32xf32, #tpu.memory_space<vmem>>, vector<1x8x32xf32>
    %81 = vector.shape_cast %80 : vector<1x8x32xf32> to vector<8x32xf32>
    "tpu.trace_start"() <{level = 10 : i32, message = "bld,bds->bls"}> : () -> ()
    %cst_51 = arith.constant dense<0.000000e+00> : vector<2x1x128xf32>
    %82 = tpu.matmul %77, %78, %cst_51 {dimension_numbers = #tpu.dot_dimension_numbers<[2], [1], [1], [2], [0, 0, 0, 1, 1, 2], [0], [0]>} : vector<2x1x8xf32>, vector<2x8x128xf32>, vector<2x1x128xf32> -> vector<2x1x128xf32>
    "tpu.trace_stop"() : () -> ()
    %cst_52 = arith.constant 0.353553385 : f32
    %83 = vector.broadcast %cst_52 : f32 to vector<2x1x128xf32>
    %84 = arith.mulf %82, %83 : vector<2x1x128xf32>
    %85 = arith.addf %84, %1 : vector<2x1x128xf32>
    %cst_53 = arith.constant dense<0xFF800000> : vector<2x1xf32>
    %86 = vector.multi_reduction <maximumf>, %85, %cst_53 [2] : vector<2x1x128xf32> to vector<2x1xf32>
    %87 = vector.shape_cast %86 : vector<2x1xf32> to vector<2x1x1xf32>
    %88 = vector.broadcast %87 : vector<2x1x1xf32> to vector<2x1x128xf32>
    %89 = arith.subf %85, %88 : vector<2x1x128xf32>
    %90 = math.exp %89 : vector<2x1x128xf32>
    %cst_54 = arith.constant dense<0.000000e+00> : vector<2x1xf32>
    %91 = vector.multi_reduction <add>, %90, %cst_54 [2] : vector<2x1x128xf32> to vector<2x1xf32>
    %92 = vector.shape_cast %91 : vector<2x1xf32> to vector<2x1x1xf32>
    "tpu.trace_start"() <{level = 10 : i32, message = "bls,bds->bld"}> : () -> ()
    %cst_55 = arith.constant dense<0.000000e+00> : vector<2x1x8xf32>
    %93 = tpu.matmul %90, %79, %cst_55 {dimension_numbers = #tpu.dot_dimension_numbers<[2], [2], [1], [1], [0, 0, 0, 1, 1, 1], [0], [0]>} : vector<2x1x128xf32>, vector<2x8x128xf32>, vector<2x1x8xf32> -> vector<2x1x8xf32>
    "tpu.trace_stop"() : () -> ()
    %94 = tpu.reciprocal %92 : vector<2x1x1xf32> -> vector<2x1x1xf32>
    %95 = vector.broadcast %94 : vector<2x1x1xf32> to vector<2x1x8xf32>
    %96 = arith.mulf %93, %95 : vector<2x1x8xf32>
    %97 = vector.shape_cast %96 : vector<2x1x8xf32> to vector<2x8xf32>
    %cst_56 = arith.constant dense<0.000000e+00> : vector<2x32xf32>
    %98 = tpu.matmul %97, %81, %cst_56 {dimension_numbers = #tpu.dot_dimension_numbers<[1], [0], [0], [1], [0, 0, 1, 1], [], []>} : vector<2x8xf32>, vector<8x32xf32>, vector<2x32xf32> -> vector<2x32xf32>
    %99 = arith.addf %75, %98 : vector<2x32xf32>
    %100 = vector.shape_cast %99 : vector<2x32xf32> to vector<2x1x32xf32>
    %c0_57 = arith.constant 0 : index
    %c0_58 = arith.constant 0 : index
    %c0_59 = arith.constant 0 : index
    %101 = vector.load %arg4[%c0_57, %c0_58, %c0_59] : memref<2x32x128xf32, #tpu.memory_space<vmem>>, vector<2x32x128xf32>
    "tpu.trace_start"() <{level = 10 : i32, message = "ble,bes->bls"}> : () -> ()
    %cst_60 = arith.constant dense<0.000000e+00> : vector<2x1x128xf32>
    %102 = tpu.matmul %100, %101, %cst_60 {dimension_numbers = #tpu.dot_dimension_numbers<[2], [1], [1], [2], [0, 0, 0, 1, 1, 2], [0], [0]>} : vector<2x1x32xf32>, vector<2x32x128xf32>, vector<2x1x128xf32> -> vector<2x1x128xf32>
    "tpu.trace_stop"() : () -> ()
    %cst_61 = arith.constant 0.176776692 : f32
    %103 = vector.broadcast %cst_61 : f32 to vector<2x1x128xf32>
    %104 = arith.mulf %102, %103 : vector<2x1x128xf32>
    %105 = vector.shape_cast %104 : vector<2x1x128xf32> to vector<2x128xf32>
    %c0_62 = arith.constant 0 : index
    %c0_63 = arith.constant 0 : index
    %106 = vector.load %arg7[%c0_62, %c0_63] : memref<2x128xf32, #tpu.memory_space<vmem>>, vector<2x128xf32>
    tpu.vector_store %arg7[%c0_62, %c0_63], %105 {strides = array<i32>} : memref<2x128xf32, #tpu.memory_space<vmem>>, vector<2x128xf32>,
    return
  }
  func.func @transform_0(%arg0: i32) -> (i32, i32) {
    %c0_i32 = arith.constant 0 : i32
    %c0_i32_0 = arith.constant 0 : i32
    return %arg0, %c0_i32 : i32, i32
  }
  func.func @transform_1(%arg0: i32) -> (i32, i32, i32) {
    %c0_i32 = arith.constant 0 : i32
    %c0_i32_0 = arith.constant 0 : i32
    %c0_i32_1 = arith.constant 0 : i32
    return %arg0, %c0_i32, %c0_i32_0 : i32, i32, i32
  }
  func.func @transform_2(%arg0: i32) -> (i32, i32, i32) {
    %c0_i32 = arith.constant 0 : i32
    %c0_i32_0 = arith.constant 0 : i32
    %c0_i32_1 = arith.constant 0 : i32
    return %arg0, %c0_i32, %c0_i32_0 : i32, i32, i32
  }
  func.func @transform_3(%arg0: i32) -> (i32, i32, i32) {
    %c0_i32 = arith.constant 0 : i32
    %c0_i32_0 = arith.constant 0 : i32
    %c0_i32_1 = arith.constant 0 : i32
    return %arg0, %c0_i32, %c0_i32_0 : i32, i32, i32
  }
  func.func @transform_4(%arg0: i32) -> (i32, i32) {
    %c0_i32 = arith.constant 0 : i32
    %c0_i32_0 = arith.constant 0 : i32
    return %arg0, %c0_i32 : i32, i32
  }
  func.func @transform_5(%arg0: i32) -> (i32, i32, i32) {
    %c0_i32 = arith.constant 0 : i32
    %c0_i32_0 = arith.constant 0 : i32
    %c0_i32_1 = arith.constant 0 : i32
    %c0_i32_2 = arith.constant 0 : i32
    return %c0_i32, %c0_i32_0, %c0_i32_1 : i32, i32, i32
  }
  func.func @transform_6(%arg0: i32) -> (i32, i32) {
    %c0_i32 = arith.constant 0 : i32
    %c0_i32_0 = arith.constant 0 : i32
    return %arg0, %c0_i32 : i32, i32
  }
}

</mosaic_0001>

<bundles_post_ra>
// kernel: tpu_custom_call.1
= control target key start
LH: loop header
LB: loop body
LE: loop exit
PB: predicated region body
PF: predicated region fallthrough
CT: control target
= control target key end

     0   :  { %11 = vsyncpa [#allocation3], 0  ;;  %s2593_s0 = inlined_call_operand.hbm [shape: f32[2,32], index: 0, kind: input, shape index: {}]   ;;  %s2594_s1 = inlined_call_operand.hbm [shape: f32[2,32,128], index: 1, kind: input, shape index: {}]   ;;  %s2595_s2 = inlined_call_operand.hbm [shape: f32[2,32,128], index: 2, kind: input, shape index: {}]   ;;  %s2596_s3 = inlined_call_operand.hbm [shape: f32[2,32,128], index: 3, kind: input, shape index: {}]   ;;  %s2597_s4 = inlined_call_operand.vmem [shape: f32[2,128], index: 4, kind: input, shape index: {}]   ;;  %s2598_s5 = inlined_call_operand.hbm [shape: f32[4,8,32], index: 5, kind: input, shape index: {}]   ;;  %s2599_s6 = inlined_call_operand.hbm [shape: f32[2,128], index: 6, kind: output, shape index: {}]  }
   0x1   :  { %12 = vsyncpa [#allocation6], 0 }
   0x2   :  { %13 = vsyncpa [#allocation9], 0 }
   0x3   :  { %14 = vsyncpa [#allocation4], 0  ;;  %s2326_s21 = smov [#allocation5]   ;;  %s2186_s25 = scalar_lea.hbm %s2594_s1, 1024 }
   0x4   :  { %s30_s22 = sshll.u32 %s2326_s21, 4  ;;  %p2187_p0 = scmp.ne.s32.totalorder %s2594_s1, %s2186_s25  ;;  %s31_s22 = int_to_ptr.vmem [resolvable:$true] %s30_s22 }
   0x5   :  { %p2190_p1 = scmp.lt.u32.totalorder %s2186_s25, %s2594_s1 }
   0x7   :  { %p2192_p2 = pnand %p2190_p1, %p2187_p0 }
   0x9   :  { %2195 = shalt.err (!%p2192_p2)
}
   0xa   :  { %s2196_s30 = scalar_lea.vmem %s31_s22, 1024  ;;  %p2201_p4 = scmp.lt.s32.totalorder %s31_s22, %s31_s22 }
   0xb   :  { %p2197_p3 = scmp.ne.s32.totalorder %s31_s22, %s2196_s30  ;;  %p2202_p5 = scmp.lt.s32.totalorder %s2196_s30, %s2196_s30 }
   0xd   :  { %p2203_p6 = por %p2202_p5, %p2201_p4 }
   0xf   :  { %p2204_p7 = pnand %p2203_p6, %p2197_p3 }
  0x11   :  { %2207 = shalt.err (!%p2204_p7)
}
  0x12   :  { %s2327_s7 = smov 128   ;;  %s2328_s8 = smov 8  }
  0x13   :  { %36 = dma.hbm_to_vmem [thread:$0]  %s2594_s1, 1024, %s31_s22, [#allocation6], %s2327_s7, %s2327_s7, %s2328_s8  }
  0x14   :  { %s2329_s11 = smov [#allocation8]   ;;  %s2330_s13 = smov [#allocation2]  }
  0x15   :  { %s54_s12 = sshll.u32 %s2329_s11, 4  ;;  %s21_s14 = sshll.u32 %s2330_s13, 4  ;;  %s55_s12 = int_to_ptr.vmem [resolvable:$true] %s54_s12  ;;  %s22_s14 = int_to_ptr.vmem [resolvable:$true] %s21_s14 }
  0x16   :  { %s2208_s17 = scalar_lea.hbm %s2596_s3, 1024 }
  0x17   :  { %p2209_p8 = scmp.ne.s32.totalorder %s2596_s3, %s2208_s17  ;;  %p2212_p9 = scmp.lt.u32.totalorder %s2208_s17, %s2596_s3 }
  0x19   :  { %p2214_p10 = pnand %p2212_p9, %p2209_p8 }
  0x1b   :  { %2217 = shalt.err (!%p2214_p10)
}
  0x1c   :  { %s2218_s1 = scalar_lea.vmem %s55_s12, 1024  ;;  %p2223_p12 = scmp.lt.s32.totalorder %s55_s12, %s55_s12 }
  0x1d   :  { %p2219_p11 = scmp.ne.s32.totalorder %s55_s12, %s2218_s1  ;;  %p2224_p13 = scmp.lt.s32.totalorder %s2218_s1, %s2218_s1 }
  0x1f   :  { %p2225_p0 = por %p2224_p13, %p2223_p12 }
  0x21   :  { %p2226_p1 = pnand %p2225_p0, %p2219_p11 }
  0x23   :  { %2229 = shalt.err (!%p2226_p1)
}
  0x24   :  { %60 = dma.hbm_to_vmem [thread:$0]  %s2596_s3, 1024, %s55_s12, [#allocation9], %s2327_s7, %s2327_s7, %s2328_s8  }
  0x25   :  { %s2230_s26 = scalar_lea.hbm %s2593_s0, 32 }
  0x26   :  { %p2231_p2 = scmp.ne.s32.totalorder %s2593_s0, %s2230_s26  ;;  %p2234_p3 = scmp.lt.u32.totalorder %s2230_s26, %s2593_s0 }
  0x28   :  { %p2236_p4 = pnand %p2234_p3, %p2231_p2 }
  0x2a   :  { %2239 = shalt.err (!%p2236_p4)
}
  0x2b   :  { %s2240_s9 = scalar_lea.vmem %s22_s14, 32  ;;  %p2245_p6 = scmp.lt.s32.totalorder %s22_s14, %s22_s14 }
  0x2c   :  { %p2241_p5 = scmp.ne.s32.totalorder %s22_s14, %s2240_s9  ;;  %p2246_p7 = scmp.lt.s32.totalorder %s2240_s9, %s2240_s9 }
  0x2e   :  { %p2247_p8 = por %p2246_p7, %p2245_p6 }
  0x30   :  { %p2248_p9 = pnand %p2247_p8, %p2241_p5 }
  0x32   :  { %2251 = shalt.err (!%p2248_p9)
}
  0x33   :  { %24 = dma.hbm_to_vmem [thread:$0]  %s2593_s0, 32, %s22_s14, [#allocation3]  }
  0x34   :  { %s2331_s11 = smov [#allocation7]   ;;  %s2332_s13 = smov [#allocation10]  }
  0x35   :  { %s42_s12 = sshll.u32 %s2331_s11, 4  ;;  %s68_s15 = sshll.u32 %s2332_s13, 4  ;;  %s43_s12 = int_to_ptr.vmem [resolvable:$true] %s42_s12  ;;  %s69_s15 = int_to_ptr.vmem [resolvable:$true] %s68_s15 }
  0x36   :  { %s2252_s18 = scalar_lea.hbm %s2595_s2, 1024 }
  0x37   :  { %p2253_p10 = scmp.ne.s32.totalorder %s2595_s2, %s2252_s18  ;;  %p2256_p11 = scmp.lt.u32.totalorder %s2252_s18, %s2595_s2 }
  0x39   :  { %p2258_p12 = pnand %p2256_p11, %p2253_p10 }
  0x3b   :  { %2261 = shalt.err (!%p2258_p12)
}
  0x3c   :  { %s2262_s0 = scalar_lea.vmem %s43_s12, 1024  ;;  %p2267_p0 = scmp.lt.s32.totalorder %s43_s12, %s43_s12 }
  0x3d   :  { %p2263_p13 = scmp.ne.s32.totalorder %s43_s12, %s2262_s0  ;;  %p2268_p1 = scmp.lt.s32.totalorder %s2262_s0, %s2262_s0 }
  0x3f   :  { %p2269_p2 = por %p2268_p1, %p2267_p0 }
  0x41   :  { %p2270_p3 = pnand %p2269_p2, %p2263_p13 }
  0x43   :  { %2273 = shalt.err (!%p2270_p3)
}
  0x44   :  { %48 = dma.hbm_to_vmem [thread:$0]  %s2595_s2, 1024, %s43_s12, [#allocation6], %s2327_s7, %s2327_s7, %s2328_s8  }
  0x45   :  { %s2274_s25 = scalar_lea.hbm %s2598_s5, 512 }
  0x46   :  { %p2275_p4 = scmp.ne.s32.totalorder %s2598_s5, %s2274_s25  ;;  %p2278_p5 = scmp.lt.u32.totalorder %s2274_s25, %s2598_s5 }
  0x48   :  { %p2280_p6 = pnand %p2278_p5, %p2275_p4 }
  0x4a   :  { %2283 = shalt.err (!%p2280_p6)
}
  0x4b   :  { %s2284_s30 = scalar_lea.vmem %s69_s15, 512  ;;  %p2289_p8 = scmp.lt.s32.totalorder %s69_s15, %s69_s15 }
  0x4c   :  { %p2285_p7 = scmp.ne.s32.totalorder %s69_s15, %s2284_s30  ;;  %p2290_p9 = scmp.lt.s32.totalorder %s2284_s30, %s2284_s30 }
  0x4e   :  { %p2291_p10 = por %p2290_p9, %p2289_p8 }
  0x50   :  { %p2292_p11 = pnand %p2291_p10, %p2285_p7 }
  0x52   :  { %2295 = shalt.err (!%p2292_p11)
}
  0x53   :  { %74 = dma.hbm_to_vmem [thread:$0]  %s2598_s5, 512, %s69_s15, [#allocation9], %s2327_s7, %s2327_s7, %s2328_s8  }
  0x54   :  { %2318 = dma.done.wait [#allocation3], 32  }
  0x55   :  { %2319 = vsyncadd [#allocation3], 4294967264 }
  0x56   :  { %2320 = dma.done.wait [#allocation6], 2048  }
  0x57   :  { %2321 = vsyncadd [#allocation6], 4294965248 }
  0x58   :  { %2322 = dma.done.wait [#allocation9], 1536  }
  0x59   :  { %2323 = vsyncadd [#allocation9], 4294965760  ;;  %v103_v0 = vlaneseq  ;;  %v2333_v1 = vmov 0.0   ;;  %vm2334_vm0 = vmmov 0   ;;  %v2335_v2 = vmov 1966171168  }
  0x5a   :  { %1999 = vmatprep.subr.mxu0 %v2333_v1  ;;  %2001 = vmatprep.mubr.msk.f32.mxu0 %vm2334_vm0, %v2333_v1  ;;  %v101_v3 = vunpack.c.l.s4 %v2335_v2  ;;  %vm145_vm1 = vcmask 64512   ;;  %v140_v7 = vld [vmem:[#allocation5] sm:$0xff]  ;;  %v1934_v8 = vld.sshfl [vmem:[#allocation2] sm:$0x11 pattern:$0x75316420] }
  0x5b   :  { %v104_v4 = vshrl.u32 %v103_v0, 7  ;;  %2004 = vmatprep.subr.mxu1 %v2333_v1  ;;  %2006 = vmatprep.mubr.msk.f32.mxu1 %vm2334_vm0, %v2333_v1  ;;  %v141_v9 = vld [vmem:[#allocation5 + $0x20] sm:$0xff]  ;;  %v125_v11 = vcombine.high %v1934_v8, %v1934_v8  ;;  %v457_v13 = vld [vmem:[#allocation5 + $0x8] sm:$0xff]  ;;  %s2336_s5 = smov 120   ;;  %s2337_s7 = smov 112   ;;  %vm294_vm2 = vcmask 1040384  }
  0x5c   :  { %v102_v5 = vunpack.c.0.s8 %v101_v3  ;;  %2000 = vmatpush3.msra.mxu0 %v140_v7  ;;  %2005 = vmatpush3.msra.mxu1 %v141_v9  ;;  %v1933_v19 = vld.sshfl [vmem:[%s2597_s4] sm:$0x11 pattern:$0x75316420]  ;;  %v142_v33 = vld [vmem:[#allocation7] sm:$0xff]  ;;  %v458_v47 = vld [vmem:[#allocation5 + $0x28] sm:$0xff] }
  0x5d   :  { %v465_v12 = vsub.s32 0, %v104_v4  ;;  %2019 = vmatprep.subr.mxu0 %v2333_v1  ;;  %2009 = vmatprep.subr.mxu1 %v2333_v1  ;;  %v99_v20 = vcombine.high %v1933_v19, %v1933_v19  ;;  %v143_v45 = vld [vmem:[#allocation7 + $0x20] sm:$0xff]  ;;  %v459_v57 = vld [vmem:[#allocation7 + $0x8] sm:$0xff]  ;;  %vm788_vm3 = vcmask 1041409   ;;  %s2338_s4 = smov 104   ;;  %vm1763_vm4 = vcmask 261120  }
  0x5e   :  { %v2454_v6 = vsub.s32 %v102_v5, %v104_v4  ;;  %v460_v4 = vld [vmem:[#allocation7 + $0x28] sm:$0xff]  ;;  %s2340_s10 = smov [#allocation11]  }
  0x5f   :  { %s1922_s11 = sshll.u32 %s2340_s10, 4  ;;  %s1923_s11 = int_to_ptr.vmem [resolvable:$true] %s1922_s11 }
  0x60   :  { %v132_v10 = vrot.slane %v1934_v8, %v2454_v6  ;;  %v139_v14 = vrot.slane %v125_v11, %v2454_v6  ;;  %v2482_v21 = vrot.slane %v1933_v19, %v2454_v6  ;;  %v2485_v25 = vrot.slane %v99_v20, %v2454_v6  ;;  %v938_v20 = vld [vmem:[#allocation5 + $0x10] sm:$0xff]  ;;  %s2296_s12 = scalar_lea.vmem %s1923_s11, 32  ;;  %p2301_p13 = scmp.lt.s32.totalorder %s1923_s11, %s1923_s11 }
  0x61   :  { %p2297_p12 = scmp.ne.s32.totalorder %s1923_s11, %s2296_s12  ;;  %p2302_p0 = scmp.lt.s32.totalorder %s2296_s12, %s2296_s12 }
  0x62   :  { %2002 = vmatmul.mubr.msk.f32.vlgmr.msra.gmra.mrb[0].mxu0 %vm145_vm1, %v132_v10  ;;  %2007 = vmatmul.mubr.msk.f32.vlgmr.msra.gmra.mrb[0].mxu1 %vm145_vm1, %v139_v14  ;;  %v2464_v15 = vrot.slane %v139_v14, %v465_v12  ;;  %v2470_v16 = vrot.slane %v132_v10, %v465_v12 }
  0x63   :  { %2020 = vmatpush3.msra.mxu0 %v457_v13  ;;  %2021 = vmatprep.mubr.msk.f32.mxu0 %vm2334_vm0, %v2333_v1  ;;  %p2303_p1 = por %p2302_p0, %p2301_p13 }
  0x64   :  { %2029 = vmatprep.subr.mxu0 %v2333_v1  ;;  %2011 = vmatprep.mubr.msk.f32.mxu1 %vm2334_vm0, %v2333_v1 }
  0x65   :  { %545 = vrot.lane.b32.xlu1 %v2464_v15, %s2336_s5  ;;  %2010 = vmatpush3.xpose.msra.mxu1 %v142_v33  ;;  %p2304_p2 = pnand %p2303_p1, %p2297_p12 }
  0x66   :  { %2014 = vmatprep.subr.mxu1 %v2333_v1 }
  0x69   :  { %467 = vrot.lane.b32.xlu1 %v2470_v16, %s2336_s5 }
  0x6d   :  { %944 = vrot.lane.b32.xlu1 %v2470_v16, %s2337_s7 }
  0xd7   :  { %v546_v17 = vpop.permute.xlu1 %545 }
  0xdb   :  { %v468_v18 = vpop.permute.xlu1 %467 }
  0xdc   :  { %2022 = vmatmul.mubr.msk.f32.vlgmr.msra.gmra.mrb[2].mxu0 %vm145_vm1, %v468_v18 }
  0xdd   :  { %2031 = vmatprep.mubr.msk.f32.mxu0 %vm2334_vm0, %v2333_v1  ;;  %2030 = vmatpush3.xpose.msra.mxu0 %v459_v57 }
  0xde   :  { %2039 = vmatprep.subr.mxu0 %v2333_v1 }
  0xdf   :  { %v945_v49 = vpop.permute.xlu1 %944 }
 0x135   :  { %v214_v22 = vpop.f32.mrb[0].mxu0  ;;  %v286_v26 = vpop.f32.mrb[0].mxu1 }
 0x136   :  { %v290_v23 = vmul.f32 0.35355338, %v214_v22  ;;  %v2003_v24 = vpop.f32.mrb[1].mxu0  ;;  %v291_v27 = vmul.f32 0.35355338, %v286_v26  ;;  %v2008_v28 = vpop.f32.mrb[1].mxu1 }
 0x137   :  { %v939_v24 = vld [vmem:[#allocation5 + $0x30] sm:$0xff] }
 0x138   :  { %v292_v29 = vadd.f32 %v290_v23, %v2482_v21  ;;  %v293_v31 = vadd.f32 %v291_v27, %v2485_v25 }
 0x13a   :  { %v295_v30 = vsel %vm294_vm2, %v292_v29, -inf  ;;  %v298_v32 = vsel %vm294_vm2, %v293_v31, -inf }
 0x13b   :  { %296 = vmax.xlane.f32.xlu0 %v295_v30 }
 0x13f   :  { %299 = vmax.xlane.f32.xlu0 %v298_v32 }
 0x1af   :  { %v537_v34 = vpop.f32.mrb[2].mxu0 }
 0x1b0   :  { %v619_v35 = vmul.f32 0.35355338, %v537_v34  ;;  %v2023_v36 = vpop.f32.mrb[3].mxu0 }
 0x1b2   :  { %v621_v37 = vadd.f32 %v619_v35, %v2482_v21 }
 0x1b4   :  { %v623_v38 = vsel %vm294_vm2, %v621_v37, -inf }
 0x1b5   :  { %624 = vmax.xlane.f32.xlu1 %v623_v38 }
 0x1c8   :  { %v297_v39 = vpop.xlane.xlu0 %296 }
 0x1c9   :  { %v301_v40 = vsub.f32 %v292_v29, %v297_v39  ;;  %v462_v29 = vld [vmem:[#allocation10 + $0x8] sm:$0xff]  ;;  %v144_v39 = vld [vmem:[#allocation10] sm:$0xff] }
 0x1cb   :  { %v303_v41 = vmul.f32 1.442695, %v301_v40 }
 0x1cc   :  { %v300_v42 = vpop.xlane.xlu0 %299 }
 0x1cd   :  { %2154 = vpow2.f32 %v303_v41  ;;  %v302_v43 = vsub.f32 %v293_v31, %v300_v42 }
 0x1cf   :  { %v305_v44 = vmul.f32 1.442695, %v302_v43 }
 0x1d1   :  { %2156 = vpow2.f32 %v305_v44 }
 0x1d7   :  { %v2155_v46 = vpop.eup %2154 }
 0x1d8   :  { %2012 = vmatmul.mubr.f32.vlgmr.msra.gmra.mrb[2].mxu1 %v2155_v46  ;;  %v307_v56 = vsel %vm294_vm2, %v2155_v46, 0.0 }
 0x1d9   :  { %2015 = vmatpush3.xpose.msra.mxu1 %v143_v45  ;;  %2016 = vmatprep.mubr.msk.f32.mxu1 %vm2334_vm0, %v2333_v1 }
 0x1da   :  { %2024 = vmatprep.subr.mxu1 %v2333_v1 }
 0x1db   :  { %v2157_v48 = vpop.eup %2156 }
 0x1dc   :  { %2017 = vmatmul.mubr.f32.vlgmr.msra.gmra.mrb[4].mxu1 %v2157_v48  ;;  %v310_v55 = vsel %vm294_vm2, %v2157_v48, 0.0 }
 0x1dd   :  { %2025 = vmatpush3.msra.mxu1 %v458_v47  ;;  %2026 = vmatprep.mubr.msk.f32.mxu1 %vm2334_vm0, %v2333_v1 }
 0x1de   :  { %2034 = vmatprep.subr.mxu1 %v2333_v1 }
 0x1e0   :  { %2027 = vmatmul.mubr.msk.f32.vlgmr.msra.gmra.mrb[6].mxu1 %vm145_vm1, %v546_v17 }
 0x1e1   :  { %2036 = vmatprep.mubr.msk.f32.mxu1 %vm2334_vm0, %v2333_v1 }
 0x1e4   :  { %2035 = vmatpush3.xpose.msra.mxu1 %v460_v4 }
 0x1e5   :  { %2049 = vmatprep.subr.mxu1 %v2333_v1 }
 0x242   :  { %v625_v50 = vpop.xlane.xlu1 %624 }
 0x243   :  { %v629_v51 = vsub.f32 %v621_v37, %v625_v50  ;;  %v941_v50 = vld [vmem:[#allocation7 + $0x30] sm:$0xff] }
 0x245   :  { %v631_v52 = vmul.f32 1.442695, %v629_v51  ;;  %v940_v51 = vld [vmem:[#allocation7 + $0x10] sm:$0xff] }
 0x247   :  { %2158 = vpow2.f32 %v631_v52 }
 0x251   :  { %v2159_v53 = vpop.eup %2158 }
 0x252   :  { %v635_v54 = vsel %vm294_vm2, %v2159_v53, 0.0  ;;  %2032 = vmatmul.mubr.f32.vlgmr.msra.gmra.mrb[4].mxu0 %v2159_v53 }
 0x253   :  { %636 = vadd.xlane.f32.xlu1 %v635_v54  ;;  %2041 = vmatprep.mubr.msk.f32.mxu0 %vm2334_vm0, %v2333_v1 }
 0x254   :  { %2040 = vmatpush3.msra.mxu0 %v462_v29 }
 0x255   :  { %2044 = vmatprep.subr.mxu0 %v2333_v1 }
 0x257   :  { %311 = vadd.xlane.f32.xlu1 %v310_v55 }
 0x25b   :  { %308 = vadd.xlane.f32.xlu1 %v307_v56 }
 0x2ab   :  { %v379_v58 = vpop.f32.mrb[2].mxu1 }
 0x2ac   :  { %v2013_v59 = vpop.f32.mrb[3].mxu1 }
 0x2af   :  { %v449_v60 = vpop.f32.mrb[4].mxu1 }
 0x2b0   :  { %v2018_v61 = vpop.f32.mrb[5].mxu1 }
 0x2b3   :  { %v615_v62 = vpop.f32.mrb[6].mxu1 }
 0x2b4   :  { %v620_v63 = vmul.f32 0.35355338, %v615_v62  ;;  %v2028_v0 = vpop.f32.mrb[7].mxu1  ;;  %v1335_v62 = vld [vmem:[#allocation5 + $0x18] sm:$0xff] }
 0x2b6   :  { %v622_v2 = vadd.f32 %v620_v63, %v2485_v25  ;;  %v943_v63 = vld [vmem:[#allocation10 + $0x10] sm:$0xff] }
 0x2b8   :  { %v626_v3 = vsel %vm294_vm2, %v622_v2, -inf }
 0x2b9   :  { %627 = vmax.xlane.f32.xlu0 %v626_v3 }
 0x2cf   :  { %1018 = vrot.lane.b32.xlu0 %v2464_v15, %s2337_s7 }
 0x2e0   :  { %v637_v5 = vpop.xlane.xlu1 %636 }
 0x2e4   :  { %v312_v7 = vpop.xlane.xlu1 %311 }
 0x2e5   :  { %2160 = vrcp.f32 %v312_v7 }
 0x2e8   :  { %v309_v8 = vpop.xlane.xlu1 %308 }
 0x2e9   :  { %2162 = vrcp.f32 %v309_v8 }
 0x2ef   :  { %v2161_v9 = vpop.eup %2160 }
 0x2f0   :  { %v456_v10 = vmul.f32 %v2161_v9, %v449_v60 }
 0x2f2   :  { %v864_v13 = vrot.slane %v456_v10, 7 }
 0x2f3   :  { %v2163_v11 = vpop.eup %2162 }
 0x2f4   :  { %v455_v12 = vmul.f32 %v2163_v11, %v379_v58 }
 0x2f6   :  { %v865_v14 = vsel %vm788_vm3, %v864_v13, %v455_v12  ;;  %v1336_v12 = vld [vmem:[#allocation5 + $0x38] sm:$0xff] }
 0x325   :  { %v707_v27 = vpop.f32.mrb[4].mxu0 }
 0x326   :  { %v2033_v28 = vpop.f32.mrb[5].mxu0 }
 0x346   :  { %v628_v17 = vpop.xlane.xlu0 %627 }
 0x347   :  { %v630_v18 = vsub.f32 %v622_v2, %v628_v17 }
 0x349   :  { %v633_v19 = vmul.f32 1.442695, %v630_v18 }
 0x34a   :  { %v1019_v26 = vpop.permute.xlu0 %1018 }
 0x34b   :  { %2164 = vpow2.f32 %v633_v19 }
 0x34c   :  { %2166 = vrcp.f32 %v637_v5 }
 0x355   :  { %v2165_v22 = vpop.eup %2164 }
 0x356   :  { %2037 = vmatmul.mubr.f32.vlgmr.msra.gmra.mrb[8].mxu1 %v2165_v22  ;;  %v638_v23 = vsel %vm294_vm2, %v2165_v22, 0.0  ;;  %v2167_v31 = vpop.eup %2166 }
 0x357   :  { %2050 = vmatpush3.msra.mxu1 %v938_v20  ;;  %639 = vadd.xlane.f32.xlu0 %v638_v23  ;;  %v783_v36 = vmul.f32 %v2167_v31, %v707_v27  ;;  %v1337_v23 = vld [vmem:[#allocation7 + $0x18] sm:$0xff] }
 0x358   :  { %2051 = vmatprep.mubr.msk.f32.mxu1 %vm2334_vm0, %v2333_v1  ;;  %2054 = vmatprep.subr.mxu1 %v2333_v1 }
 0x35a   :  { %2052 = vmatmul.mubr.msk.f32.vlgmr.msra.gmra.mrb[10].mxu1 %vm145_vm1, %v945_v49 }
 0x35b   :  { %2055 = vmatpush3.msra.mxu1 %v939_v24  ;;  %2056 = vmatprep.mubr.msk.f32.mxu1 %vm2334_vm0, %v2333_v1 }
 0x35c   :  { %2064 = vmatprep.subr.mxu1 %v2333_v1 }
 0x35e   :  { %2057 = vmatmul.mubr.msk.f32.vlgmr.msra.gmra.mrb[12].mxu1 %vm145_vm1, %v1019_v26 }
 0x35f   :  { %2066 = vmatprep.mubr.msk.f32.mxu1 %vm2334_vm0, %v2333_v1 }
 0x362   :  { %2065 = vmatpush3.xpose.msra.mxu1 %v941_v50 }
 0x363   :  { %2074 = vmatprep.subr.mxu1 %v2333_v1 }
 0x3e4   :  { %v640_v30 = vpop.xlane.xlu0 %639 }
 0x3e5   :  { %2168 = vrcp.f32 %v640_v30  ;;  %v1338_v30 = vld [vmem:[#allocation7 + $0x38] sm:$0xff] }
 0x3ef   :  { %v2169_v32 = vpop.eup %2168 }
 0x429   :  { %v777_v33 = vpop.f32.mrb[8].mxu1 }
 0x42a   :  { %v784_v34 = vmul.f32 %v2169_v32, %v777_v33  ;;  %v2038_v35 = vpop.f32.mrb[9].mxu1 }
 0x42c   :  { %v787_v37 = vrot.slane %v784_v34, 7 }
 0x42d   :  { %v1014_v38 = vpop.f32.mrb[10].mxu1 }
 0x42e   :  { %v789_v40 = vsel %vm788_vm3, %v787_v37, %v783_v36  ;;  %v2053_v41 = vpop.f32.mrb[11].mxu1  ;;  %v1092_v43 = vmul.f32 0.35355338, %v1014_v38 }
 0x42f   :  { %2042 = vmatmul.mubr.msk.f32.vlgmr.msra.gmra.mrb[6].mxu0 %vm145_vm1, %v789_v40  ;;  %v1755_v40 = vld [vmem:[#allocation8] sm:$0xff]  ;;  %v1756_v41 = vld [vmem:[#allocation8 + $0x8] sm:$0xff] }
 0x430   :  { %2045 = vmatpush3.msra.mxu0 %v144_v39  ;;  %2046 = vmatprep.mubr.msk.f32.mxu0 %vm2334_vm0, %v2333_v1  ;;  %v1094_v48 = vadd.f32 %v1092_v43, %v2482_v21  ;;  %v1340_v39 = vld [vmem:[#allocation10 + $0x18] sm:$0xff]  ;;  %v2122_v43 = vpack.c.bf16 %v1756_v41, %v1755_v40 }
 0x431   :  { %v1088_v42 = vpop.f32.mrb[12].mxu1  ;;  %2059 = vmatprep.subr.mxu0 %v2333_v1 }
 0x432   :  { %v1093_v44 = vmul.f32 0.35355338, %v1088_v42  ;;  %v2058_v45 = vpop.f32.mrb[13].mxu1  ;;  %v1096_v49 = vsel %vm294_vm2, %v1094_v48, -inf  ;;  %v2339_v42 = vmov 0.0|0.0  }
 0x434   :  { %v1095_v46 = vadd.f32 %v1093_v44, %v2485_v25 }
 0x436   :  { %v1099_v47 = vsel %vm294_vm2, %v1095_v46, -inf }
 0x437   :  { %1100 = vmax.xlane.f32.xlu1 %v1099_v47  ;;  %2047 = vmatmul.mubr.msk.f32.vlgmr.msra.gmra.mrb[6].mxu0 %vm145_vm1, %v865_v14 }
 0x438   :  { %2061 = vmatprep.mubr.msk.f32.mxu0 %vm2334_vm0, %v2333_v1  ;;  %2060 = vmatpush3.xpose.msra.mxu0 %v940_v51 }
 0x439   :  { %2069 = vmatprep.subr.mxu0 %v2333_v1 }
 0x43b   :  { %1097 = vmax.xlane.f32.xlu1 %v1096_v49 }
 0x4c4   :  { %v1101_v52 = vpop.xlane.xlu1 %1100 }
 0x4c5   :  { %v1103_v53 = vsub.f32 %v1095_v46, %v1101_v52 }
 0x4c7   :  { %v1106_v54 = vmul.f32 1.442695, %v1103_v53 }
 0x4c8   :  { %v1098_v55 = vpop.xlane.xlu1 %1097 }
 0x4c9   :  { %2170 = vpow2.f32 %v1106_v54  ;;  %v1102_v56 = vsub.f32 %v1094_v48, %v1098_v55 }
 0x4cb   :  { %v1104_v57 = vmul.f32 1.442695, %v1102_v56  ;;  %v1759_v56 = vld [vmem:[#allocation8 + $0x20] sm:$0xff] }
 0x4cd   :  { %2172 = vpow2.f32 %v1104_v57  ;;  %v1760_v57 = vld [vmem:[#allocation8 + $0x28] sm:$0xff] }
 0x4d3   :  { %v2171_v58 = vpop.eup %2170 }
 0x4d4   :  { %2067 = vmatmul.mubr.f32.vlgmr.msra.gmra.mrb[14].mxu1 %v2171_v58  ;;  %v1111_v59 = vsel %vm294_vm2, %v2171_v58, 0.0  ;;  %v2128_v58 = vpack.c.bf16 %v1760_v57, %v1759_v56 }
 0x4d5   :  { %1112 = vadd.xlane.f32.xlu0 %v1111_v59  ;;  %2076 = vmatprep.mubr.msk.f32.mxu1 %vm2334_vm0, %v2333_v1  ;;  %v1757_v59 = vld [vmem:[#allocation8 + $0x10] sm:$0xff] }
 0x4d6   :  { %2075 = vmatpush3.msra.mxu1 %v1335_v62  ;;  %v1761_v62 = vld [vmem:[#allocation8 + $0x30] sm:$0xff] }
 0x4d7   :  { %v2173_v60 = vpop.eup %2172  ;;  %2084 = vmatprep.subr.mxu1 %v2333_v1 }
 0x4d8   :  { %2062 = vmatmul.mubr.f32.vlgmr.msra.gmra.mrb[8].mxu0 %v2173_v60  ;;  %v1108_v61 = vsel %vm294_vm2, %v2173_v60, 0.0  ;;  %v1758_v60 = vld [vmem:[#allocation8 + $0x18] sm:$0xff] }
 0x4d9   :  { %1109 = vadd.xlane.f32.xlu1 %v1108_v61  ;;  %2071 = vmatprep.mubr.msk.f32.mxu0 %vm2334_vm0, %v2333_v1  ;;  %v2125_v61 = vpack.c.bf16 %v1758_v60, %v1757_v59 }
 0x4da   :  { %2070 = vmatpush3.msra.mxu0 %v943_v63  ;;  %v1762_v63 = vld [vmem:[#allocation8 + $0x38] sm:$0xff] }
 0x4db   :  { %2079 = vmatprep.subr.mxu0 %v2333_v1 }
 0x4ea   :  { %1341 = vrot.lane.b32.xlu1 %v2470_v16, %s2338_s4 }
 0x4eb   :  { %1415 = vrot.lane.b32.xlu0 %v2464_v15, %s2338_s4 }
 0x562   :  { %v1113_v3 = vpop.xlane.xlu0 %1112 }
 0x563   :  { %2174 = vrcp.f32 %v1113_v3 }
 0x566   :  { %v1110_v0 = vpop.xlane.xlu1 %1109  ;;  %v1416_v14 = vpop.permute.xlu0 %1415 }
 0x567   :  { %2176 = vrcp.f32 %v1110_v0  ;;  %v2131_v0 = vpack.c.bf16 %v1762_v63, %v1761_v62 }
 0x56a   :  { %v1342_v2 = vpop.permute.xlu1 %1341 }
 0x56b   :  { %2077 = vmatmul.mubr.msk.f32.vlgmr.msra.gmra.mrb[16].mxu1 %vm145_vm1, %v1342_v2 }
 0x56c   :  { %2086 = vmatprep.mubr.msk.f32.mxu1 %vm2334_vm0, %v2333_v1  ;;  %2085 = vmatpush3.xpose.msra.mxu1 %v1337_v23 }
 0x56d   :  { %v2175_v4 = vpop.eup %2174  ;;  %2121 = vmatprep.subr.bf16.mxu1 %v2339_v42 }
 0x571   :  { %v2177_v8 = vpop.eup %2176 }
 0x5a7   :  { %v1250_v5 = vpop.f32.mrb[14].mxu1 }
 0x5a8   :  { %v1257_v7 = vmul.f32 %v2175_v4, %v1250_v5  ;;  %v2068_v16 = vpop.f32.mrb[15].mxu1 }
 0x5aa   :  { %v1260_v9 = vrot.slane %v1257_v7, 7 }
 0x5ab   :  { %v1180_v15 = vpop.f32.mrb[8].mxu0 }
 0x5ac   :  { %v1256_v10 = vmul.f32 %v2177_v8, %v1180_v15  ;;  %v2063_v11 = vpop.f32.mrb[9].mxu0 }
 0x5ae   :  { %v1261_v13 = vsel %vm788_vm3, %v1260_v9, %v1256_v10 }
 0x5af   :  { %2072 = vmatmul.mubr.msk.f32.vlgmr.msra.gmra.mrb[6].mxu0 %vm145_vm1, %v1261_v13 }
 0x5b0   :  { %2080 = vmatpush3.msra.mxu0 %v1336_v12  ;;  %2081 = vmatprep.mubr.msk.f32.mxu0 %vm2334_vm0, %v2333_v1 }
 0x5b1   :  { %2089 = vmatprep.subr.mxu0 %v2333_v1 }
 0x5b3   :  { %2082 = vmatmul.mubr.msk.f32.vlgmr.msra.gmra.mrb[10].mxu0 %vm145_vm1, %v1416_v14 }
 0x5b4   :  { %2091 = vmatprep.mubr.msk.f32.mxu0 %vm2334_vm0, %v2333_v1 }
 0x5b7   :  { %2090 = vmatpush3.xpose.msra.mxu0 %v1338_v30 }
 0x5b8   :  { %2094 = vmatprep.subr.mxu0 %v2333_v1 }
 0x63e   :  { %v1411_v17 = vpop.f32.mrb[16].mxu1 }
 0x63f   :  { %v1489_v18 = vmul.f32 0.35355338, %v1411_v17  ;;  %v2078_v19 = vpop.f32.mrb[17].mxu1 }
 0x641   :  { %v1491_v20 = vadd.f32 %v1489_v18, %v2482_v21 }
 0x643   :  { %v1493_v22 = vsel %vm294_vm2, %v1491_v20, -inf }
 0x644   :  { %1494 = vmax.xlane.f32.xlu0 %v1493_v22 }
 0x686   :  { %v1485_v24 = vpop.f32.mrb[10].mxu0 }
 0x687   :  { %v1490_v26 = vmul.f32 0.35355338, %v1485_v24  ;;  %v2083_v27 = vpop.f32.mrb[11].mxu0 }
 0x689   :  { %v1492_v28 = vadd.f32 %v1490_v26, %v2485_v25 }
 0x68b   :  { %v1496_v29 = vsel %vm294_vm2, %v1492_v28, -inf }
 0x68c   :  { %1497 = vmax.xlane.f32.xlu1 %v1496_v29 }
 0x6d1   :  { %v1495_v31 = vpop.xlane.xlu0 %1494 }
 0x6d2   :  { %v1499_v32 = vsub.f32 %v1491_v20, %v1495_v31 }
 0x6d4   :  { %v1501_v21 = vmul.f32 1.442695, %v1499_v32 }
 0x6d6   :  { %2178 = vpow2.f32 %v1501_v21 }
 0x6e0   :  { %v2179_v33 = vpop.eup %2178 }
 0x6e1   :  { %2087 = vmatmul.mubr.f32.vlgmr.msra.gmra.mrb[18].mxu1 %v2179_v33  ;;  %v1505_v34 = vsel %vm294_vm2, %v2179_v33, 0.0 }
 0x6e2   :  { %1506 = vadd.xlane.f32.xlu1 %v1505_v34  ;;  %2107 = vmatprep.mubr.msk.f32.mxu1 %vm2334_vm0, %v2333_v1 }
 0x6e3   :  { %2123 = vmatpush3.bf16.msra.mxu1 %v2122_v43 }
 0x6e4   :  { %2124 = vmatprep.subr.bf16.mxu1 %v2339_v42 }
 0x6e7   :  { %2126 = vmatpush3.bf16.msra.mxu1 %v2125_v61 }
 0x719   :  { %v1498_v25 = vpop.xlane.xlu1 %1497 }
 0x71a   :  { %v1500_v35 = vsub.f32 %v1492_v28, %v1498_v25 }
 0x71c   :  { %v1503_v36 = vmul.f32 1.442695, %v1500_v35 }
 0x71e   :  { %2180 = vpow2.f32 %v1503_v36 }
 0x728   :  { %v2181_v37 = vpop.eup %2180 }
 0x729   :  { %2092 = vmatmul.mubr.f32.vlgmr.msra.gmra.mrb[12].mxu0 %v2181_v37  ;;  %v1508_v38 = vsel %vm294_vm2, %v2181_v37, 0.0 }
 0x72a   :  { %1509 = vadd.xlane.f32.xlu0 %v1508_v38  ;;  %2096 = vmatprep.mubr.msk.f32.mxu0 %vm2334_vm0, %v2333_v1 }
 0x72b   :  { %2095 = vmatpush3.msra.mxu0 %v1340_v39 }
 0x72c   :  { %2127 = vmatprep.subr.bf16.mxu0 %v2339_v42 }
 0x76f   :  { %v1507_v47 = vpop.xlane.xlu1 %1506 }
 0x7b4   :  { %v1577_v44 = vpop.f32.mrb[18].mxu1 }
 0x7b5   :  { %v2088_v45 = vpop.f32.mrb[19].mxu1 }
 0x7b7   :  { %v1510_v46 = vpop.xlane.xlu0 %1509 }
 0x7b8   :  { %2182 = vrcp.f32 %v1510_v46 }
 0x7b9   :  { %2184 = vrcp.f32 %v1507_v47 }
 0x7c2   :  { %v2183_v48 = vpop.eup %2182 }
 0x7c3   :  { %v2185_v52 = vpop.eup %2184 }
 0x7c4   :  { %v1653_v53 = vmul.f32 %v2185_v52, %v1577_v44 }
 0x7fc   :  { %v1647_v49 = vpop.f32.mrb[12].mxu0 }
 0x7fd   :  { %v1654_v50 = vmul.f32 %v2183_v48, %v1647_v49  ;;  %v2093_v51 = vpop.f32.mrb[13].mxu0 }
 0x7ff   :  { %v1657_v54 = vrot.slane %v1654_v50, 7 }
 0x801   :  { %v1658_v55 = vsel %vm788_vm3, %v1657_v54, %v1653_v53 }
 0x802   :  { %2097 = vmatmul.mubr.msk.f32.vlgmr.msra.gmra.mrb[6].mxu0 %vm145_vm1, %v1658_v55 }
 0x803   :  { %2118 = vmatprep.mubr.msk.f32.mxu0 %vm2334_vm0, %v2333_v1  ;;  %2129 = vmatpush3.bf16.msra.mxu0 %v2128_v58 }
 0x804   :  { %2130 = vmatprep.subr.bf16.mxu0 %v2339_v42 }
 0x807   :  { %2132 = vmatpush3.bf16.msra.mxu0 %v2131_v0 }
 0x8d5   :  { %v1727_v2 = vpop.f32.mrb[6].mxu0 }
 0x8d6   :  { %v1739_v3 = vrot.slane %v1727_v2, %v2454_v6  ;;  %v2098_v4 = vpop.f32.mrb[7].mxu0 }
 0x8d8   :  { %v1740_v5 = vcombine.high %v1739_v3, %v1739_v3  ;;  %v1747_v1 = vrot.slane %v1739_v3, %v2454_v6 }
 0x8da   :  { %v1754_v7 = vrot.slane %v1740_v5, %v2454_v6  ;;  %2108 = vmatmul.mubr.msk.f32.vlgmr.msra.gmra.mrb[20].mxu1 %vm1763_vm4, %v1747_v1 }
 0x8dc   :  { %2119 = vmatmul.mubr.msk.f32.vlgmr.msra.gmra.mrb[14].mxu0 %vm1763_vm4, %v1754_v7 }
 0x9ad   :  { %v1832_v16 = vpop.f32.mrb[20].mxu1 }
 0x9ae   :  { %v2109_v8 = vpop.f32.mrb[21].mxu1  ;;  %v1908_v11 = vmul.f32 0.17677669, %v1832_v16 }
 0x9af   :  { %v1904_v15 = vpop.f32.mrb[14].mxu0 }
 0x9b0   :  { %v1909_v9 = vmul.f32 0.17677669, %v1904_v15  ;;  %v2120_v10 = vpop.f32.mrb[15].mxu0 }
 0x9b2   :  { %v1912_v12 = vrot.slane %v1909_v9, 7 }
 0x9b4   :  { %v1913_v13 = vsel %vm788_vm3, %v1912_v12, %v1908_v11 }
 0x9b5   :  { %1915 = vst [vmem:[#allocation11] sm:$0x3] %v1913_v13 }
 0x9b6   :  { %2307 = shalt.err (!%p2304_p2)
}
 0x9b7   :  { %s2308_s16 = scalar_lea.hbm %s2599_s6, 32 }
 0x9b8   :  { %p2309_p3 = scmp.ne.s32.totalorder %s2599_s6, %s2308_s16  ;;  %p2312_p4 = scmp.lt.u32.totalorder %s2308_s16, %s2599_s6 }
 0x9ba   :  { %p2314_p5 = pnand %p2312_p4, %p2309_p3 }
 0x9bc   :  { %2317 = shalt.err (!%p2314_p5)
}
 0x9bd   :  { %1925 = dma.vmem_to_hbm [thread:$0]  %s1923_s11, 32, %s2599_s6, [#allocation4]  }
 0x9be   :  { %2324 = dma.done.wait [#allocation4], 32  }
 0x9bf   :  { %2325 = vsyncadd [#allocation4], 4294967264 }
 0x9c0   :  { %1929 = vsyncpa [#allocation3], 1 }
 0x9c1   :  { %1930 = vsyncpa [#allocation6], 1 }
 0x9c2   :  { %1931 = vsyncpa [#allocation9], 1 }
 0x9c3   :  { %1932 = vsyncpa [#allocation4], 1 }

</bundles_post_ra>
